<compile_context>
chip_gen: v7x
topology: tpu7x:2x2x1
jax: 0.10.0
libtpu: 0.0.40
codegen_flags: <defaults>
</compile_context>

<pallas_src>
import jax
import jax.numpy as jnp
from jax.experimental import pallas as pl
from jax.experimental.pallas import tpu as pltpu

# Matches the PyTorch script: activation_max_val = torch.Tensor([1])
ACTIVATION_MAX_VAL = 1.0

# Dtypes the kernel consumes directly (cast to f32 happens in-kernel,
# cutting HBM read traffic for narrow inputs vs. a wrapper upcast).
_KERNEL_DTYPES = (jnp.float32, jnp.bfloat16, jnp.float16, jnp.int8, jnp.int32)

# Below this element count, a plain XLA fused multiply beats kernel launch +
# layout plumbing overhead.
_SMALL_N_DEFAULT = 1 << 16


def _sublane_align(dtype):
    # Sublane tiling requirement: 8 for 32-bit, 16 for 16-bit, 32 for 8-bit.
    itemsize = jnp.dtype(dtype).itemsize
    return max(8, 32 // itemsize)


def _pick_layout(n, sub_align):
    """Choose (lanes, rows, tail) — wide lanes, aligned bulk, tiny jnp tail."""
    # Exact fit: widest lane count whose full reshape needs no tail.
    for lanes in (2048, 1024, 512, 256, 128):
        if n % lanes == 0 and (n // lanes) % sub_align == 0:
            return lanes, n // lanes, 0
    # Ragged: keep lanes wide; process the aligned prefix in the kernel and the
    # tail (< lanes * sub_align elements) with plain jnp outside.
    for lanes in (2048, 1024, 512, 256, 128):
        chunk = lanes * sub_align
        if n >= chunk:
            bulk = (n // chunk) * chunk
            return lanes, bulk // lanes, n - bulk
    return 0, 0, n  # everything is tail (only reachable below the fast-path cut)


def _pick_tile_rows(rows, lanes, sub_align, target_out_bytes=4 << 20):
    """Largest row-tile (multiple of sub_align, divides rows) with ~4 MiB f32 blocks."""
    target = max(sub_align, (target_out_bytes // (lanes * 4)) // sub_align * sub_align)
    tile = min(rows, target)
    tile = max(sub_align, (tile // sub_align) * sub_align)
    while tile > sub_align and rows % tile != 0:
        tile -= sub_align
    # If the whole array fits one block, split it in half (when cleanly possible)
    # so the "parallel" grid axis has >= 2 steps for v7x's two TensorCores.
    if tile == rows and rows >= 2 * sub_align and (rows // 2) % sub_align == 0:
        tile = rows // 2
    return tile


def _dequant_kernel(scale_ref, x_ref, o_ref):
    # Elementwise: upcast (if needed), scale by the SMEM scalar, cast to output.
    o_ref[...] = (x_ref[...].astype(jnp.float32) * scale_ref[0, 0]).astype(o_ref.dtype)


def dequantize(x, factor, activation_max_val=ACTIVATION_MAX_VAL,
               out_dtype=jnp.float32, small_n_threshold=_SMALL_N_DEFAULT):
    """Pallas implementation of Dequantization.forward.

    x: any-shape array (NCHW conv activations in the reference script).
    factor: quantization scale factor (Python scalar or device scalar).
    """
    x = jnp.asarray(x)
    if not any(x.dtype == d for d in _KERNEL_DTYPES):
        x = x.astype(jnp.float32)

    orig_shape = x.shape
    n = x.size

    # Folded scalar on device: factor / 127 * activation_max_val.
    scale = (jnp.asarray(factor, jnp.float32) / jnp.float32(127.0)
             * jnp.asarray(activation_max_val, jnp.float32).reshape(()))

    if n == 0:
        return jnp.zeros(orig_shape, out_dtype)

    # Small-input fast path: launch + layout overhead dominates below ~64K elems.
    if n <= small_n_threshold:
        return (x.astype(jnp.float32) * scale).astype(out_dtype)

    sub_align = _sublane_align(x.dtype)
    lanes, rows, tail = _pick_layout(n, sub_align)
    if rows == 0:  # pathological tiny ragged size — plain jnp
        return (x.astype(jnp.float32) * scale).astype(out_dtype)

    bulk = rows * lanes
    flat = x.reshape(-1)
    x2d = (flat[:bulk] if tail else flat).reshape(rows, lanes)

    tile_r = _pick_tile_rows(rows, lanes, sub_align)

    # VMEM budget: double-buffered input + output blocks plus headroom; stays
    # under v7x's 64 MiB physical, raises v5e's 16 MiB default scope if needed.
    in_itemsize = jnp.dtype(x.dtype).itemsize
    out_itemsize = jnp.dtype(out_dtype).itemsize
    block_bytes = tile_r * lanes * (in_itemsize + out_itemsize)
    vmem_limit = int(min(48 << 20, max(32 << 20, 2 * block_bytes + (4 << 20))))

    scale_smem = scale.reshape(1, 1)

    out2d = pl.pallas_call(
        _dequant_kernel,
        out_shape=jax.ShapeDtypeStruct((rows, lanes), out_dtype),
        grid=(rows // tile_r,),
        in_specs=[
            pl.BlockSpec(memory_space=pltpu.MemorySpace.SMEM),   # folded scale
            pl.BlockSpec((tile_r, lanes), lambda i: (i, 0)),
        ],
        out_specs=pl.BlockSpec((tile_r, lanes), lambda i: (i, 0)),
        compiler_params=pltpu.CompilerParams(
            dimension_semantics=("parallel",),
            vmem_limit_bytes=vmem_limit,
        ),
    )(scale_smem, x2d)

    out_flat = out2d.reshape(-1)
    if tail:
        # Tiny tail (< lanes * sub_align elements) handled with plain jnp; the
        # concatenate re-streams the output once but avoids the old pad + slice
        # double pass over input AND output.
        tail_out = (flat[bulk:].astype(jnp.float32) * scale).astype(out_dtype)
        out_flat = jnp.concatenate([out_flat, tail_out])
    return out_flat.reshape(orig_shape)


if __name__ == "__main__":
    key = jax.random.PRNGKey(0)
    factor = 0.5  # the `factor` argument passed to Dequantization(factor)
    amax = ACTIVATION_MAX_VAL

    # 1) Spec-sized NCHW activation, forced through the Pallas path.
    x = jax.random.normal(key, (2, 4, 16, 16), dtype=jnp.float32)
    out = jax.block_until_ready(dequantize(x, factor, small_n_threshold=0))
    ref = x * factor / 127.0 * float(amax)
    assert out.shape == x.shape and out.dtype == jnp.float32
    assert jnp.allclose(out, ref, rtol=1e-5, atol=1e-7)

    # 2) Same input through the default small-input fast path.
    out_fast = jax.block_until_ready(dequantize(x, factor))
    assert out_fast.shape == x.shape and out_fast.dtype == jnp.float32
    assert jnp.allclose(out_fast, ref, rtol=1e-5, atol=1e-7)

    # 3) Larger aligned activation: multi-step tiled grid (lane-dense 2048 slab).
    x2 = jax.random.normal(jax.random.PRNGKey(1), (8, 64, 32, 32), dtype=jnp.float32)
    out2 = jax.block_until_ready(dequantize(x2, factor))
    ref2 = x2 * factor / 127.0 * float(amax)
    assert out2.shape == x2.shape and out2.dtype == jnp.float32
    assert jnp.allclose(out2, ref2, rtol=1e-5, atol=1e-7)

    # 4) Ragged element count: Pallas bulk + tiny jnp tail.
    x3 = jax.random.normal(jax.random.PRNGKey(2), (3, 100, 33, 33), dtype=jnp.float32)
    out3 = jax.block_until_ready(dequantize(x3, factor))
    ref3 = x3 * factor / 127.0 * float(amax)
    assert out3.shape == x3.shape and out3.dtype == jnp.float32
    assert jnp.allclose(out3, ref3, rtol=1e-5, atol=1e-7)

    print("KERNEL_OK")
</pallas_src>

<mosaic_0001>
module attributes {stable_mosaic.version = 11 : i64} {
  func.func @_dequant_kernel(%arg0: i32, %arg1: memref<1x1xf32, #tpu.memory_space<smem>>, %arg2: memref<8x256xf32, #tpu.memory_space<vmem>>, %arg3: memref<8x256xf32, #tpu.memory_space<vmem>>) attributes {dimension_semantics = [#tpu.dimension_semantics<parallel>], iteration_bounds = array<i64: 1>, scalar_prefetch = 0 : i64, scratch_operands = 0 : i64, tpu.core_type = #tpu.core_type<tc>, window_params = [{transform_indices = @transform_0, window_bounds = array<i64: 1, 1>}, {transform_indices = @transform_1, window_bounds = array<i64: 8, 256>}, {transform_indices = @transform_2, window_bounds = array<i64: 8, 256>}]} {
    %c0 = arith.constant 0 : index
    %c0_0 = arith.constant 0 : index
    %0 = vector.load %arg2[%c0, %c0_0] : memref<8x256xf32, #tpu.memory_space<vmem>>, vector<8x256xf32>
    %c0_1 = arith.constant 0 : index
    %c0_2 = arith.constant 0 : index
    %1 = memref.load %arg1[%c0_1, %c0_2] : memref<1x1xf32, #tpu.memory_space<smem>>
    %2 = vector.broadcast %1 : f32 to vector<8x256xf32>
    %3 = arith.mulf %0, %2 : vector<8x256xf32>
    %c0_3 = arith.constant 0 : index
    %c0_4 = arith.constant 0 : index
    %4 = vector.load %arg3[%c0_3, %c0_4] : memref<8x256xf32, #tpu.memory_space<vmem>>, vector<8x256xf32>
    tpu.vector_store %arg3[%c0_3, %c0_4], %3 {strides = array<i32>} : memref<8x256xf32, #tpu.memory_space<vmem>>, vector<8x256xf32>,
    return
  }
  func.func @transform_0(%arg0: i32) -> (i32, i32) {
    %c0_i32 = arith.constant 0 : i32
    %c0_i32_0 = arith.constant 0 : i32
    %c0_i32_1 = arith.constant 0 : i32
    return %c0_i32, %c0_i32_0 : i32, i32
  }
  func.func @transform_1(%arg0: i32) -> (i32, i32) {
    %c0_i32 = arith.constant 0 : i32
    %c0_i32_0 = arith.constant 0 : i32
    return %arg0, %c0_i32 : i32, i32
  }
  func.func @transform_2(%arg0: i32) -> (i32, i32) {
    %c0_i32 = arith.constant 0 : i32
    %c0_i32_0 = arith.constant 0 : i32
    return %arg0, %c0_i32 : i32, i32
  }
}

</mosaic_0001>

<bundles_post_ra>
// kernel: tpu_custom_call.1
= control target key start
LH: loop header
LB: loop body
LE: loop exit
PB: predicated region body
PF: predicated region fallthrough
CT: control target
= control target key end

     0   :  { %8 = vsyncpa [#allocation4], 0  ;;  %s142_s0 = inlined_call_operand.<no memory space> [shape: f32[1,1], index: 0, kind: input, shape index: {}]   ;;  %s143_s1 = inlined_call_operand.hbm [shape: f32[8,256], index: 1, kind: input, shape index: {}]   ;;  %s144_s2 = inlined_call_operand.hbm [shape: f32[8,256], index: 2, kind: output, shape index: {}]  }
   0x1   :  { %9 = vsyncpa [#allocation5], 0  ;;  %s98_s9 = smov [#allocation3]   ;;  %s50_s13 = scalar_lea.hbm %s143_s1, 256 }
   0x2   :  { %s18_s10 = sshll.u32 %s98_s9, 4  ;;  %p51_p0 = scmp.ne.s32.totalorder %s143_s1, %s50_s13  ;;  %s19_s10 = int_to_ptr.vmem [resolvable:$true] %s18_s10 }
   0x3   :  { %p54_p1 = scmp.lt.u32.totalorder %s50_s13, %s143_s1 }
   0x5   :  { %p56_p2 = pnand %p54_p1, %p51_p0 }
   0x7   :  { %59 = shalt.err (!%p56_p2)
}
   0x8   :  { %s60_s18 = scalar_lea.vmem %s19_s10, 256  ;;  %p65_p4 = scmp.lt.s32.totalorder %s19_s10, %s19_s10 }
   0x9   :  { %p61_p3 = scmp.ne.s32.totalorder %s19_s10, %s60_s18  ;;  %p66_p5 = scmp.lt.s32.totalorder %s60_s18, %s60_s18 }
   0xb   :  { %p67_p6 = por %p66_p5, %p65_p4 }
   0xd   :  { %p68_p7 = pnand %p67_p6, %p61_p3 }
   0xf   :  { %71 = shalt.err (!%p68_p7)
}
  0x10   :  { %21 = dma.hbm_to_vmem [thread:$0]  %s143_s1, 256, %s19_s10, [#allocation4]  }
  0x11   :  { %94 = dma.done.wait [#allocation4], 256  }
  0x12   :  { %95 = vsyncadd [#allocation4], 4294967040  ;;  %v28_v0 = vstv %s142_s0  ;;  %s99_s23 = smov [#allocation6]   ;;  %v25_v1 = vld [vmem:[#allocation3] sm:$0xff]  ;;  %v26_v2 = vld [vmem:[#allocation3 + $0x8] sm:$0xff] }
  0x13   :  { %s39_s24 = sshll.u32 %s99_s23, 4  ;;  %v29_v3 = vmul.f32 %v28_v0, %v25_v1  ;;  %v30_v4 = vmul.f32 %v28_v0, %v26_v2  ;;  %s40_s24 = int_to_ptr.vmem [resolvable:$true] %s39_s24 }
  0x14   :  { %s72_s25 = scalar_lea.vmem %s40_s24, 256  ;;  %p77_p9 = scmp.lt.s32.totalorder %s40_s24, %s40_s24 }
  0x15   :  { %31 = vst [vmem:[#allocation6] sm:$0xff] %v29_v3  ;;  %32 = vst [vmem:[#allocation6 + $0x8] sm:$0xff] %v30_v4  ;;  %p73_p8 = scmp.ne.s32.totalorder %s40_s24, %s72_s25  ;;  %p78_p10 = scmp.lt.s32.totalorder %s72_s25, %s72_s25 }
  0x17   :  { %p79_p11 = por %p78_p10, %p77_p9 }
  0x19   :  { %p80_p12 = pnand %p79_p11, %p73_p8 }
  0x1b   :  { %83 = shalt.err (!%p80_p12)
}
  0x1c   :  { %s84_s0 = scalar_lea.hbm %s144_s2, 256 }
  0x1d   :  { %p85_p13 = scmp.ne.s32.totalorder %s144_s2, %s84_s0  ;;  %p88_p0 = scmp.lt.u32.totalorder %s84_s0, %s144_s2 }
  0x1f   :  { %p90_p1 = pnand %p88_p0, %p85_p13 }
  0x21   :  { %93 = shalt.err (!%p90_p1)
}
  0x22   :  { %42 = dma.vmem_to_hbm [thread:$0]  %s40_s24, 256, %s144_s2, [#allocation5]  }
  0x23   :  { %96 = dma.done.wait [#allocation5], 256  }
  0x24   :  { %97 = vsyncadd [#allocation5], 4294967040 }
  0x25   :  { %46 = vsyncpa [#allocation4], 1 }
  0x26   :  { %47 = vsyncpa [#allocation5], 1 }

</bundles_post_ra>
